<compile_context>
chip_gen: v6e
topology: v6e:2x2x1
jax: 0.10.0
libtpu: 0.0.40
codegen_flags: <defaults>
</compile_context>

<pallas_src>
import jax
import jax.numpy as jnp
from jax.experimental import pallas as pl
from jax.experimental.pallas import tpu as pltpu

LANE = 128
SUBLANE = 8
MAX_BATCH_TILE = 1024          # largest batch tile (rows) per grid step
SINGLE_STEP_MAX_ROWS = 512     # at/below this, one grid step (launch-latency regime)


def _round_up(x, m):
    return ((x + m - 1) // m) * m


def mlp_kernel(x_ref, w1_ref, b1_ref, w2_ref, b2_ref, o_ref):
    """One batch tile of the fused forward: relu(relu(x @ W1 + b1) @ W2 + b2)."""
    # x arrives as f32 straight from HBM; cast to bf16 in-kernel (VPU, hidden by DMA).
    x = x_ref[...].astype(w1_ref.dtype)                                  # (TB, D) bf16
    # Linear 1 + ReLU (f32 accumulation on the MXU).
    h = jnp.dot(x, w1_ref[...], preferred_element_type=jnp.float32)      # (TB, Hp) f32
    h = jnp.maximum(h + b1_ref[...], 0.0)
    # Linear 2 + ReLU.
    h = h.astype(w2_ref.dtype)                                           # bf16 for the MXU
    y = jnp.dot(h, w2_ref[...], preferred_element_type=jnp.float32)      # (TB, Op) f32
    o_ref[...] = jnp.maximum(y + b2_ref[...], 0.0).astype(o_ref.dtype)   # bf16 writeback


def prepare_params(w1, b1, w2, b2, compute_dtype=jnp.bfloat16):
    """One-time conversion from PyTorch nn.Linear layout to the kernel layout.

    w1: (hidden, in)   -> (in, hidden_pad)   transposed, zero-padded to 128 lanes, bf16
    b1: (hidden,)      -> (1, hidden_pad)    f32
    w2: (out, hidden)  -> (hidden_pad, out_pad)
    b2: (out,)         -> (1, out_pad)       f32
    Zero padding is exact: padded hidden columns produce ReLU(0+0)=0 and multiply zero
    rows of W2; padded output columns are dropped by the consumer / wrapper slice.
    """
    H, D = w1.shape
    O = w2.shape[0]
    Hp = _round_up(max(H, LANE), LANE)
    Op = _round_up(max(O, LANE), LANE)

    w1t = jnp.zeros((D, Hp), compute_dtype).at[:, :H].set(
        jnp.transpose(w1).astype(compute_dtype))
    b1p = jnp.zeros((1, Hp), jnp.float32).at[:, :H].set(b1.astype(jnp.float32))
    w2t = jnp.zeros((Hp, Op), compute_dtype).at[:H, :O].set(
        jnp.transpose(w2).astype(compute_dtype))
    b2p = jnp.zeros((1, Op), jnp.float32).at[:, :O].set(b2.astype(jnp.float32))
    return w1t, b1p, w2t, b2p, O


def fashion_mnist_model_v1(x_nchw, w1t, b1p, w2t, b2p, out_features, slice_output=True):
    """Forward pass equivalent to the PyTorch module, given pre-prepared params.

    x_nchw: (B, C, H, W) float32; flattened row-major to (B, D) like nn.Flatten.
    Returns (B, out_features) bfloat16 if slice_output, else the padded (B, 128) output
    so the 10-column selection can be fused into the consumer.
    """
    B = x_nchw.shape[0]
    D, Hp = w1t.shape
    Op = w2t.shape[1]

    x2d = x_nchw.reshape(B, -1)          # nn.Flatten; stays f32, cast happens in-kernel
    assert x2d.shape[1] == D, f"flattened dim {x2d.shape[1]} != weight in-dim {D}"

    # Batch tiling. Small B: one grid step (launch-latency dominated anyway).
    # Large B: >=2 steps so v7x's two TensorCores both get work; tile capped at 1024 rows.
    if B <= SINGLE_STEP_MAX_ROWS:
        TB = max(SUBLANE, _round_up(B, SUBLANE))
    else:
        TB = min(MAX_BATCH_TILE, _round_up(pl.cdiv(B, 2), SUBLANE))
    grid = (pl.cdiv(B, TB),)
    rows_eff = grid[0] * TB              # includes the partial last block's dead rows

    flops = 2 * rows_eff * (D * Hp + Hp * Op)
    bytes_accessed = (
        rows_eff * D * 4                                   # x streamed as f32
        + w1t.size * w1t.dtype.itemsize + w2t.size * w2t.dtype.itemsize
        + b1p.size * 4 + b2p.size * 4
        + rows_eff * Op * 2                                # bf16 output writeback
    )

    out_padded = pl.pallas_call(
        mlp_kernel,
        out_shape=jax.ShapeDtypeStruct((B, Op), jnp.bfloat16),
        grid=grid,
        in_specs=[
            pl.BlockSpec((TB, D), lambda i: (i, 0)),    # x: batch-tiled (partial last block OK)
            pl.BlockSpec((D, Hp), lambda i: (0, 0)),    # W1: VMEM-resident across steps
            pl.BlockSpec((1, Hp), lambda i: (0, 0)),    # b1: lane-padded row
            pl.BlockSpec((Hp, Op), lambda i: (0, 0)),   # W2: VMEM-resident across steps
            pl.BlockSpec((1, Op), lambda i: (0, 0)),    # b2: lane-padded row
        ],
        out_specs=pl.BlockSpec((TB, Op), lambda i: (i, 0)),
        compiler_params=pltpu.CompilerParams(
            dimension_semantics=("parallel",),
        ),
        cost_estimate=pl.CostEstimate(
            flops=flops, transcendentals=0, bytes_accessed=bytes_accessed),
    )(x2d, w1t, b1p, w2t, b2p)

    if not slice_output:
        return out_padded                      # consumer fuses the [:, :out_features] select
    return out_padded[:, :out_features]


def init_linear_params(key, in_features, out_features):
    """Deterministic init mimicking PyTorch nn.Linear defaults (uniform +/- 1/sqrt(fan_in))."""
    kw, kb = jax.random.split(key)
    bound = 1.0 / (in_features ** 0.5)
    w = jax.random.uniform(kw, (out_features, in_features), jnp.float32, -bound, bound)
    b = jax.random.uniform(kb, (out_features,), jnp.float32, -bound, bound)
    return w, b


if __name__ == "__main__":
    # Small shapes consistent with the module: batch=2, C=1, spatial=16x16
    # => input_shape=256, hidden_units=32, output_shape=10.
    # (For B this small a fused XLA dot would match the kernel; the Pallas path is kept
    #  here so the kernel itself is exercised.)
    B, C, Hs, Ws = 2, 1, 16, 16
    input_shape = C * Hs * Ws
    hidden_units = 32
    output_shape = 10

    key = jax.random.PRNGKey(0)
    kx, k1, k2 = jax.random.split(key, 3)

    x = jax.random.normal(kx, (B, C, Hs, Ws), jnp.float32)
    w1, b1 = init_linear_params(k1, input_shape, hidden_units)
    w2, b2 = init_linear_params(k2, hidden_units, output_shape)

    # One-time parameter preparation (transpose + lane-pad + bf16 cast).
    w1t, b1p, w2t, b2p, O = prepare_params(w1, b1, w2, b2)

    out = fashion_mnist_model_v1(x, w1t, b1p, w2t, b2p, O)
    out = jax.block_until_ready(out)

    # Pure-JAX reference of the same forward pass (matching bf16 inputs, f32 accumulation).
    x2d = x.reshape(B, -1).astype(jnp.bfloat16)
    w1b = w1.astype(jnp.bfloat16)
    w2b = w2.astype(jnp.bfloat16)
    h_ref = jnp.maximum(
        jnp.dot(x2d, w1b.T, preferred_element_type=jnp.float32) + b1, 0.0)
    ref = jnp.maximum(
        jnp.dot(h_ref.astype(jnp.bfloat16), w2b.T,
                preferred_element_type=jnp.float32) + b2, 0.0)

    out_f32 = out.astype(jnp.float32)
    assert out.shape == (B, output_shape)
    assert jnp.allclose(out_f32, ref, atol=2e-2, rtol=2e-2), (
        f"max abs err {jnp.max(jnp.abs(out_f32 - ref))}")

    print("KERNEL_OK")
</pallas_src>

<mosaic_0001>
module attributes {stable_mosaic.version = 11 : i64} {
  func.func @mlp_kernel(%arg0: i32, %arg1: memref<8x256xf32, #tpu.memory_space<vmem>>, %arg2: memref<256x128xbf16, #tpu.memory_space<vmem>>, %arg3: memref<1x128xf32, #tpu.memory_space<vmem>>, %arg4: memref<128x128xbf16, #tpu.memory_space<vmem>>, %arg5: memref<1x128xf32, #tpu.memory_space<vmem>>, %arg6: memref<8x128xbf16, #tpu.memory_space<vmem>>) attributes {dimension_semantics = [#tpu.dimension_semantics<parallel>], iteration_bounds = array<i64: 1>, scalar_prefetch = 0 : i64, scratch_operands = 0 : i64, tpu.core_type = #tpu.core_type<tc>, window_params = [{transform_indices = @transform_0, window_bounds = array<i64: 8, 256>}, {pipeline_mode = #tpu.pipeline_mode<synchronous>, transform_indices = @transform_1, window_bounds = array<i64: 256, 128>}, {pipeline_mode = #tpu.pipeline_mode<synchronous>, transform_indices = @transform_2, window_bounds = array<i64: 1, 128>}, {pipeline_mode = #tpu.pipeline_mode<synchronous>, transform_indices = @transform_3, window_bounds = array<i64: 128, 128>}, {pipeline_mode = #tpu.pipeline_mode<synchronous>, transform_indices = @transform_4, window_bounds = array<i64: 1, 128>}, {transform_indices = @transform_5, window_bounds = array<i64: 8, 128>}]} {
    %c0 = arith.constant 0 : index
    %c0_0 = arith.constant 0 : index
    %0 = vector.load %arg1[%c0, %c0_0] : memref<8x256xf32, #tpu.memory_space<vmem>>, vector<8x256xf32>
    %1 = arith.truncf %0 : vector<8x256xf32> to vector<8x256xbf16>
    %c0_1 = arith.constant 0 : index
    %c0_2 = arith.constant 0 : index
    %2 = vector.load %arg2[%c0_1, %c0_2] : memref<256x128xbf16, #tpu.memory_space<vmem>>, vector<256x128xbf16>
    %cst = arith.constant dense<0.000000e+00> : vector<8x128xf32>
    %3 = tpu.matmul %1, %2, %cst {dimension_numbers = #tpu.dot_dimension_numbers<[1], [0], [0], [1], [0, 0, 1, 1], [], []>} : vector<8x256xbf16>, vector<256x128xbf16>, vector<8x128xf32> -> vector<8x128xf32>
    %c0_3 = arith.constant 0 : index
    %c0_4 = arith.constant 0 : index
    %4 = vector.load %arg3[%c0_3, %c0_4] : memref<1x128xf32, #tpu.memory_space<vmem>>, vector<1x128xf32>
    %5 = vector.broadcast %4 : vector<1x128xf32> to vector<8x128xf32>
    %6 = arith.addf %3, %5 : vector<8x128xf32>
    %cst_5 = arith.constant 0.000000e+00 : f32
    %7 = vector.broadcast %cst_5 : f32 to vector<8x128xf32>
    %8 = arith.maximumf %6, %7 : vector<8x128xf32>
    %9 = arith.truncf %8 : vector<8x128xf32> to vector<8x128xbf16>
    %c0_6 = arith.constant 0 : index
    %c0_7 = arith.constant 0 : index
    %10 = vector.load %arg4[%c0_6, %c0_7] : memref<128x128xbf16, #tpu.memory_space<vmem>>, vector<128x128xbf16>
    %cst_8 = arith.constant dense<0.000000e+00> : vector<8x128xf32>
    %11 = tpu.matmul %9, %10, %cst_8 {dimension_numbers = #tpu.dot_dimension_numbers<[1], [0], [0], [1], [0, 0, 1, 1], [], []>} : vector<8x128xbf16>, vector<128x128xbf16>, vector<8x128xf32> -> vector<8x128xf32>
    %c0_9 = arith.constant 0 : index
    %c0_10 = arith.constant 0 : index
    %12 = vector.load %arg5[%c0_9, %c0_10] : memref<1x128xf32, #tpu.memory_space<vmem>>, vector<1x128xf32>
    %13 = vector.broadcast %12 : vector<1x128xf32> to vector<8x128xf32>
    %14 = arith.addf %11, %13 : vector<8x128xf32>
    %cst_11 = arith.constant 0.000000e+00 : f32
    %15 = vector.broadcast %cst_11 : f32 to vector<8x128xf32>
    %16 = arith.maximumf %14, %15 : vector<8x128xf32>
    %17 = arith.truncf %16 : vector<8x128xf32> to vector<8x128xbf16>
    %c0_12 = arith.constant 0 : index
    %c0_13 = arith.constant 0 : index
    %18 = vector.load %arg6[%c0_12, %c0_13] : memref<8x128xbf16, #tpu.memory_space<vmem>>, vector<8x128xbf16>
    tpu.vector_store %arg6[%c0_12, %c0_13], %17 {strides = array<i32>} : memref<8x128xbf16, #tpu.memory_space<vmem>>, vector<8x128xbf16>,
    return
  }
  func.func @transform_0(%arg0: i32) -> (i32, i32) {
    %c0_i32 = arith.constant 0 : i32
    %c0_i32_0 = arith.constant 0 : i32
    return %arg0, %c0_i32 : i32, i32
  }
  func.func @transform_1(%arg0: i32) -> (i32, i32) {
    %c0_i32 = arith.constant 0 : i32
    %c0_i32_0 = arith.constant 0 : i32
    %c0_i32_1 = arith.constant 0 : i32
    return %c0_i32, %c0_i32_0 : i32, i32
  }
  func.func @transform_2(%arg0: i32) -> (i32, i32) {
    %c0_i32 = arith.constant 0 : i32
    %c0_i32_0 = arith.constant 0 : i32
    %c0_i32_1 = arith.constant 0 : i32
    return %c0_i32, %c0_i32_0 : i32, i32
  }
  func.func @transform_3(%arg0: i32) -> (i32, i32) {
    %c0_i32 = arith.constant 0 : i32
    %c0_i32_0 = arith.constant 0 : i32
    %c0_i32_1 = arith.constant 0 : i32
    return %c0_i32, %c0_i32_0 : i32, i32
  }
  func.func @transform_4(%arg0: i32) -> (i32, i32) {
    %c0_i32 = arith.constant 0 : i32
    %c0_i32_0 = arith.constant 0 : i32
    %c0_i32_1 = arith.constant 0 : i32
    return %c0_i32, %c0_i32_0 : i32, i32
  }
  func.func @transform_5(%arg0: i32) -> (i32, i32) {
    %c0_i32 = arith.constant 0 : i32
    %c0_i32_0 = arith.constant 0 : i32
    return %arg0, %c0_i32 : i32, i32
  }
}

</mosaic_0001>

<bundles_post_ra>
// kernel: tpu_custom_call.1
= control target key start
LH: loop header
LB: loop body
LE: loop exit
PB: predicated region body
PF: predicated region fallthrough
CT: control target
= control target key end

     0   :  { %10 = vsyncpa [#allocation3], 0  ;;  %s710_s0 = inlined_call_operand.hbm [shape: f32[2,256], index: 0, kind: input, shape index: {}]   ;;  %s711_s1 = inlined_call_operand.hbm [shape: bf16[256,128], index: 1, kind: input, shape index: {}]   ;;  %s712_s2 = inlined_call_operand.vmem [shape: f32[1,128], index: 2, kind: input, shape index: {}]   ;;  %s713_s3 = inlined_call_operand.hbm [shape: bf16[128,128], index: 3, kind: input, shape index: {}]   ;;  %s714_s4 = inlined_call_operand.vmem [shape: f32[1,128], index: 4, kind: input, shape index: {}]   ;;  %s715_s5 = inlined_call_operand.hbm [shape: bf16[2,128], index: 5, kind: output, shape index: {}]  }
   0x1   :  { %11 = vsyncpa [#allocation6], 0 }
   0x2   :  { %12 = vsyncpa [#allocation4], 0 }
   0x3   :  { %17 = vsyncadd [#allocation3], 192  ;;  %s639_s18 = smov [#allocation5]   ;;  %s640_s20 = smov [#allocation2]  }
   0x4   :  { %s30_s19 = sshll.u32 %s639_s18, 4  ;;  %s18_s21 = sshll.u32 %s640_s20, 4  ;;  %s31_s19 = int_to_ptr.vmem [resolvable:$true] %s30_s19  ;;  %s19_s21 = int_to_ptr.vmem [resolvable:$true] %s18_s21 }
   0x5   :  { %s561_s22 = scalar_lea.vmem %s31_s19, 2048  ;;  %p566_p1 = scmp.lt.s32.totalorder %s31_s19, %s31_s19 }
   0x6   :  { %p562_p0 = scmp.ne.s32.totalorder %s31_s19, %s561_s22  ;;  %p567_p2 = scmp.lt.s32.totalorder %s561_s22, %s561_s22 }
   0x8   :  { %p568_p3 = por %p567_p2, %p566_p1 }
   0xa   :  { %p569_p4 = pnand %p568_p3, %p562_p0 }
   0xc   :  { %572 = shalt.err (!%p569_p4)
}
   0xd   :  { %s641_s23 = smov 64   ;;  %s642_s24 = smov 4  }
   0xe   :  { %36 = dma.hbm_to_vmem [thread:$0]  %s711_s1, 2048, %s31_s19, [#allocation6], %s641_s23, %s641_s23, %s642_s24  }
   0xf   :  { %s581_s27 = scalar_lea.vmem %s19_s21, 64  ;;  %s585_s28 = scalar_lea.vmem %s19_s21, 256 }
  0x10   :  { %p582_p5 = scmp.ne.s32.totalorder %s19_s21, %s581_s27  ;;  %p586_p6 = scmp.lt.s32.totalorder %s19_s21, %s19_s21 }
  0x11   :  { %p587_p7 = scmp.lt.s32.totalorder %s585_s28, %s581_s27 }
  0x13   :  { %p588_p8 = por %p587_p7, %p586_p6 }
  0x15   :  { %p589_p9 = pnand %p588_p8, %p582_p5 }
  0x17   :  { %592 = shalt.err (!%p589_p9)
}
  0x18   :  { %24 = dma.hbm_to_vmem [thread:$0]  %s710_s0, 64, %s19_s21, [#allocation3], %s641_s23, %s641_s23, %s642_s24  }
  0x19   :  { %s643_s6 = smov [#allocation7]  }
  0x1a   :  { %s44_s7 = sshll.u32 %s643_s6, 4  ;;  %s45_s7 = int_to_ptr.vmem [resolvable:$true] %s44_s7 }
  0x1b   :  { %s601_s8 = scalar_lea.vmem %s45_s7, 1024  ;;  %p606_p11 = scmp.lt.s32.totalorder %s45_s7, %s45_s7 }
  0x1c   :  { %p602_p10 = scmp.ne.s32.totalorder %s45_s7, %s601_s8  ;;  %p607_p12 = scmp.lt.s32.totalorder %s601_s8, %s601_s8 }
  0x1e   :  { %p608_p13 = por %p607_p12, %p606_p11 }
  0x20   :  { %p609_p0 = pnand %p608_p13, %p602_p10 }
  0x22   :  { %612 = shalt.err (!%p609_p0)
}
  0x23   :  { %50 = dma.hbm_to_vmem [thread:$0]  %s713_s3, 1024, %s45_s7, [#allocation6], %s641_s23, %s641_s23, %s642_s24  }
  0x24   :  { %633 = dma.done.wait [#allocation3], 256  }
  0x25   :  { %634 = vsyncadd [#allocation3], 4294967040 }
  0x26   :  { %635 = dma.done.wait [#allocation6], 3072  }
  0x27   :  { %636 = vsyncadd [#allocation6], 4294964224  ;;  %v644_v0 = vmov 0.0   ;;  %v525_v1 = vld [vmem:[#allocation5 + $0x78] sm:$0xff]   ;;  %v527_v3 = vld [vmem:[#allocation5 + $0x70] sm:$0xff]   ;;  %v76_v7 = vlaneseq  ;;  %vm645_vm0 = vmmov 0  }
  0x28   :  { %493 = vmatprep.subr.bf16.mxu1 %v644_v0  ;;  %v526_v2 = vld [vmem:[#allocation5 + $0x38] sm:$0xff]   ;;  %462 = vmatprep.subr.bf16.mxu0 %v525_v1  ;;  %v528_v4 = vld [vmem:[#allocation5 + $0x30] sm:$0xff]   ;;  %v529_v5 = vld [vmem:[#allocation5 + $0x68] sm:$0xff]   ;;  %v646_v42 = vmov 1966171168  }
  0x29   :  { %463 = vmatpush3.bf16.msra.mxu0 %v526_v2  ;;  %v530_v6 = vld [vmem:[#allocation5 + $0x28] sm:$0xff]   ;;  %v531_v8 = vld [vmem:[#allocation5 + $0x60] sm:$0xff]   ;;  %v690_v10 = vshrl.u32 %v76_v7, 7  ;;  %v533_v11 = vld [vmem:[#allocation5 + $0x58] sm:$0xff]   ;;  %509 = vmatprep.mubr.msk.bf16.mxu1 %vm645_vm0, %v644_v0  ;;  %v385_v43 = vunpack.c.l.s4 %v646_v42 }
  0x2a   :  { %464 = vmatprep.subr.bf16.mxu0 %v527_v3  ;;  %v532_v9 = vld [vmem:[#allocation5 + $0x20] sm:$0xff]   ;;  %v534_v12 = vld [vmem:[#allocation5 + $0x18] sm:$0xff]   ;;  %v535_v13 = vld [vmem:[#allocation5 + $0x50] sm:$0xff]  }
  0x2b   :  { %v536_v14 = vld [vmem:[#allocation5 + $0x10] sm:$0xff]   ;;  %v552_v16 = vld.sshfl [vmem:[#allocation2 + $0x8] sm:$0xff pattern:$0x76325410]  ;;  %v537_v18 = vld [vmem:[#allocation5 + $0x48] sm:$0xff]   ;;  %v386_v45 = vunpack.c.0.s8 %v385_v43 }
  0x2c   :  { %v551_v15 = vld.sshfl [vmem:[#allocation2] sm:$0xff pattern:$0x76325410]  ;;  %v543_v17 = vld [vmem:[#allocation7 + $0x38] sm:$0xff]   ;;  %v538_v20 = vld [vmem:[#allocation5 + $0x8] sm:$0xff]  }
  0x2d   :  { %465 = vmatpush3.bf16.msra.mxu0 %v528_v4  ;;  %494 = vmatpush3.bf16.msra.mxu1 %v543_v17  ;;  %v544_v19 = vld [vmem:[#allocation7 + $0x30] sm:$0xff]   ;;  %v88_v21 = vcombine.high %v551_v15, %v552_v16  ;;  %v539_v22 = vld [vmem:[#allocation5 + $0x40] sm:$0xff]   ;;  %v545_v23 = vld [vmem:[#allocation7 + $0x28] sm:$0xff]   ;;  %v87_v25 = vcombine.low %v551_v15, %v552_v16  ;;  %v389_v50 = vsub.s32 %v386_v45, %v690_v10 }
  0x2e   :  { %466 = vmatprep.subr.bf16.mxu0 %v529_v5  ;;  %495 = vmatprep.subr.bf16.mxu1 %v644_v0  ;;  %v540_v26 = vld [vmem:[#allocation5] sm:$0xff]   ;;  %v547_v29 = vld [vmem:[#allocation7 + $0x18] sm:$0xff]   ;;  %v548_v30 = vld [vmem:[#allocation7 + $0x10] sm:$0xff]  }
  0x2f   :  { %v92_v24 = vpack.c.bf16 %v88_v21, %v88_v21  ;;  %v546_v27 = vld [vmem:[#allocation7 + $0x20] sm:$0xff]   ;;  %v91_v28 = vpack.c.bf16 %v87_v25, %v87_v25  ;;  %v549_v31 = vld [vmem:[#allocation7 + $0x8] sm:$0xff]   ;;  %v434_v34 = vld [vmem:[%s712_s2] ss:$0 sm:$0xff] }
  0x30   :  { %v550_v32 = vld [vmem:[#allocation7] sm:$0xff]   ;;  %v451_v44 = vld [vmem:[%s714_s4] ss:$0 sm:$0xff] }
  0x31   :  { %467 = vmatpush3.bf16.msra.mxu0 %v530_v6  ;;  %496 = vmatpush3.bf16.msra.mxu1 %v544_v19 }
  0x32   :  { %468 = vmatprep.subr.bf16.mxu0 %v531_v8  ;;  %260 = vmatprep.mubr.bf16.mxu0 %v92_v24 }
  0x33   :  { %497 = vmatprep.subr.bf16.mxu1 %v644_v0 }
  0x35   :  { %469 = vmatpush3.bf16.msra.mxu0 %v532_v9  ;;  %498 = vmatpush3.bf16.msra.mxu1 %v545_v23 }
  0x36   :  { %470 = vmatprep.subr.bf16.mxu0 %v533_v11  ;;  %499 = vmatprep.subr.bf16.mxu1 %v644_v0 }
  0x39   :  { %471 = vmatpush3.bf16.msra.mxu0 %v534_v12  ;;  %500 = vmatpush3.bf16.msra.mxu1 %v546_v27 }
  0x3a   :  { %472 = vmatprep.subr.bf16.mxu0 %v535_v13  ;;  %501 = vmatprep.subr.bf16.mxu1 %v644_v0 }
  0x3d   :  { %473 = vmatpush3.bf16.msra.mxu0 %v536_v14  ;;  %502 = vmatpush3.bf16.msra.mxu1 %v547_v29 }
  0x3e   :  { %474 = vmatprep.subr.bf16.mxu0 %v537_v18  ;;  %503 = vmatprep.subr.bf16.mxu1 %v644_v0 }
  0x41   :  { %475 = vmatpush3.bf16.msra.mxu0 %v538_v20  ;;  %504 = vmatpush3.bf16.msra.mxu1 %v548_v30 }
  0x42   :  { %476 = vmatprep.subr.bf16.mxu0 %v539_v22  ;;  %505 = vmatprep.subr.bf16.mxu1 %v644_v0 }
  0x45   :  { %477 = vmatpush3.bf16.msra.mxu0 %v540_v26  ;;  %506 = vmatpush3.bf16.msra.mxu1 %v549_v31 }
  0x46   :  { %507 = vmatprep.subr.bf16.mxu1 %v644_v0 }
  0x48   :  { %261 = vmatmul.mubr.bf16.vlgmr.msra.gmra.mxu0 %v91_v28 }
  0x49   :  { %508 = vmatpush3.bf16.msra.mxu1 %v550_v32 }
 0x108   :  { %v478_v33 = vpop.f32.mrf.mxu0 }
 0x10a   :  { %v479_v35 = vpop.f32.mrf.mxu0 }
 0x10b   :  { %v480_v36 = vadd.f32 %v479_v35, %v478_v33 }
 0x10c   :  { %v481_v37 = vpop.f32.mrf.mxu0 }
 0x10d   :  { %v263_v38 = vadd.f32 %v480_v36, %v434_v34 }
 0x10e   :  { %v482_v39 = vpop.f32.mrf.mxu0 }
 0x10f   :  { %v268_v40 = vmax.f32 %v263_v38, 0.0 }
 0x111   :  { %v269_v41 = vpack.c.bf16 %v268_v40, %v268_v40 }
 0x113   :  { %510 = vmatmul.mubr.bf16.vlgmr.msra.gmra.mxu1 %v269_v41 }
 0x1d3   :  { %v375_v46 = vpop.f32.mrf.mxu1 }
 0x1d4   :  { %v376_v47 = vadd.f32 %v451_v44, %v375_v46 }
 0x1d5   :  { %v511_v48 = vpop.f32.mrf.mxu1 }
 0x1d6   :  { %v381_v49 = vmax.f32 %v376_v47, 0.0 }
 0x1d7   :  { %v378_v51 = vpop.f32.mrf.mxu1 }
 0x1d8   :  { %v382_v52 = vpack.c.bf16 %v381_v49, %v381_v49 }
 0x1d9   :  { %v512_v53 = vpop.f32.mrf.mxu1 }
 0x1da   :  { %v390_v54 = vrot.slane %v382_v52, %v389_v50 }
 0x1dc   :  { %v391_v55 = vcombine.high %v390_v54, %v390_v54  ;;  %v398_v56 = vrot.slane %v390_v54, %v389_v50  ;;  %460 = vst.sshfl [vmem:[#allocation8] sm:$0x1 pattern:$0x73625140] %v390_v54 }
 0x1de   :  { %v405_v57 = vrot.slane %v391_v55, %v389_v50  ;;  %v406_v58 = vcombine.high %v398_v56, %v398_v56  ;;  %461 = vst.sshfl [vmem:[#allocation8 + $0x1] sm:$0x1 pattern:$0x73625140] %v391_v55 }
 0x1e0   :  { %v407_v59 = vcombine.high %v405_v57, %v405_v57  ;;  %414 = vst [vmem:[#allocation8 + $0x2] sm:$0x1] %v406_v58 }
 0x1e2   :  { %415 = vst [vmem:[#allocation8 + $0x3] sm:$0x1] %v407_v59 }
 0x1e3   :  { %420 = vsyncadd [#allocation4], 48  ;;  %s647_s2 = smov [#allocation8]  }
 0x1e4   :  { %s421_s4 = sshll.u32 %s647_s2, 4  ;;  %s422_s4 = int_to_ptr.vmem [resolvable:$true] %s421_s4 }
 0x1e5   :  { %s613_s12 = scalar_lea.vmem %s422_s4, 16  ;;  %s617_s13 = scalar_lea.vmem %s422_s4, 64 }
 0x1e6   :  { %p614_p1 = scmp.ne.s32.totalorder %s422_s4, %s613_s12  ;;  %p618_p2 = scmp.lt.s32.totalorder %s422_s4, %s422_s4 }
 0x1e7   :  { %p619_p3 = scmp.lt.s32.totalorder %s617_s13, %s613_s12 }
 0x1e9   :  { %p620_p4 = por %p619_p3, %p618_p2 }
 0x1eb   :  { %p621_p5 = pnand %p620_p4, %p614_p1 }
 0x1ed   :  { %624 = shalt.err (!%p621_p5)
}
 0x1ee   :  { %s648_s14 = smov 16   ;;  %s649_s15 = smov 1  }
 0x1ef   :  { %427 = dma.vmem_to_hbm [thread:$0]  %s422_s4, 16, %s715_s5, [#allocation4], %s648_s14, %s648_s14, %s649_s15  }
 0x1f0   :  { %637 = dma.done.wait [#allocation4], 64  }
 0x1f1   :  { %638 = vsyncadd [#allocation4], 4294967232 }
 0x1f2   :  { %431 = vsyncpa [#allocation3], 1 }
 0x1f3   :  { %432 = vsyncpa [#allocation6], 1 }
 0x1f4   :  { %433 = vsyncpa [#allocation4], 1 }

</bundles_post_ra>
